<compile_context>
chip_gen: v7x
topology: tpu7x:2x2x1
jax: 0.10.0
libtpu: 0.0.40
codegen_flags: <defaults>
</compile_context>

<pallas_src>
import functools

import jax
import jax.numpy as jnp
from jax.experimental import pallas as pl
from jax.experimental.pallas import tpu as pltpu
import numpy as np

IN_FEAT = 78  # fixed by nn.Linear(78, nfeat) in the reference module


def gcn_kernel(x_ref, adj_ref,
               we_ref, be_ref,
               w1_ref, b1_ref,
               w2_ref, b2_ref,
               w3_ref, b3_ref,
               wf_ref, bf_ref,
               out_ref, *, tb, n):
    # One grid step == TB batch elements.  Weight matmuls run on the flattened
    # (TB*N, F) activations; the graph propagation uses the batched adjacency.
    adj = adj_ref[...]                                   # (TB, N, N) bf16
    x2d = x_ref[...].reshape(tb * n, IN_FEAT)            # (TB*N, 78) f32

    # embedding: Linear(78, nfeat)
    h = jnp.dot(x2d, we_ref[...], preferred_element_type=jnp.float32) + be_ref[...]

    def gconv(h2d, w_ref, b_ref, relu):
        # support = h @ W  (flattened over the whole batch block -> full MXU rows)
        s = jnp.dot(h2d, w_ref[...], preferred_element_type=jnp.float32)
        f = s.shape[-1]
        s3 = s.reshape(tb, n, f).astype(jnp.bfloat16)
        # output = adj @ support  (batched over the TB block, f32 accumulation)
        o = jnp.einsum('bij,bjf->bif', adj, s3,
                       preferred_element_type=jnp.float32)
        o = o + b_ref[...]
        if relu:
            o = jnp.maximum(o, 0.0)
        return o.reshape(tb * n, f)

    h = gconv(h, w1_ref, b1_ref, relu=True)    # gc1 + relu
    h = gconv(h, w2_ref, b2_ref, relu=True)    # gc2 + relu
    h = gconv(h, w3_ref, b3_ref, relu=False)   # gc3 (no relu yet)

    # TODO(synk): F.dropout(training=True) is stochastic; implemented as eval-mode identity.
    h = jnp.maximum(h, 0.0)                    # relu

    # Fused epilogue: mean over nodes (sum * 1/N) then fc, one (TB,nhid)@(nhid,1) dot.
    nhid = h.shape[-1]
    pooled = jnp.sum(h.reshape(tb, n, nhid), axis=1) * (1.0 / n)   # (TB, nhid)
    score = jnp.dot(pooled, wf_ref[...],
                    preferred_element_type=jnp.float32) + bf_ref[...]  # (TB, 1)

    # Lane-dense store: one (1, TB) row per grid step.
    out_ref[...] = score.reshape(1, 1, tb)


def _pick_tb(B, N):
    """Pick the batch-block size so double-buffered inputs + activations fit VMEM."""
    # Pipelined (double-buffered) per-batch-element bytes: x f32 + adj bf16,
    # plus a rough allowance for in-kernel f32 activation temporaries (<=128 feats).
    per_b = 2 * (N * IN_FEAT * 4 + N * N * 2) + 4 * N * 4 * 128
    budget = 24 * 1024 * 1024          # leaves headroom inside v7x's 64 MiB VMEM
    tb = max(1, min(B, budget // max(per_b, 1), 256))
    # Feed the MXU full 256-row tiles on v6e/v7x when possible (128 divides 256 too).
    if N <= 256 and 256 % N == 0 and tb * N >= 256:
        rows = 256 // N
        tb = max(rows, (tb // rows) * rows)
    return int(tb)


def gcn_forward(x, adj, params):
    B, N, F = x.shape
    assert F == IN_FEAT
    assert N % 8 == 0, "node count should be a multiple of 8 (sublane tiling)"
    nfeat = params["we"].shape[1]
    nhid = params["w3"].shape[1]

    tb = _pick_tb(B, N)
    nblk = -(-B // tb)                 # cdiv
    b_pad = nblk * tb
    if b_pad != B:
        x = jnp.pad(x, ((0, b_pad - B), (0, 0), (0, 0)))
        adj = jnp.pad(adj, ((0, b_pad - B), (0, 0), (0, 0)))

    x = x.astype(jnp.float32)
    adj_bf16 = adj.astype(jnp.bfloat16)   # halve adjacency HBM traffic / MXU input width

    const = lambda shape: pl.BlockSpec(shape, lambda b: (0, 0))  # weights stay resident

    kernel = functools.partial(gcn_kernel, tb=tb, n=N)

    out = pl.pallas_call(
        kernel,
        out_shape=jax.ShapeDtypeStruct((nblk, 1, tb), jnp.float32),
        grid_spec=pltpu.PrefetchScalarGridSpec(
            num_scalar_prefetch=0,
            grid=(nblk,),
            in_specs=[
                pl.BlockSpec((tb, N, IN_FEAT), lambda b: (b, 0, 0)),   # x
                pl.BlockSpec((tb, N, N),       lambda b: (b, 0, 0)),   # adj (bf16)
                const((IN_FEAT, nfeat)), const((1, nfeat)),            # embedding
                const((nfeat, 50)),      const((1, 50)),               # gc1
                const((50, 30)),         const((1, 30)),               # gc2
                const((30, nhid)),       const((1, nhid)),             # gc3
                const((nhid, 1)),        const((1, 1)),                # fc
            ],
            out_specs=pl.BlockSpec((1, 1, tb), lambda b: (b, 0, 0)),
        ),
        compiler_params=pltpu.CompilerParams(
            dimension_semantics=("parallel",),        # shards across v7x's 2 TCs
            vmem_limit_bytes=48 * 1024 * 1024),
    )(x, adj_bf16,
      params["we"], params["be"],
      params["w1"], params["b1"],
      params["w2"], params["b2"],
      params["w3"], params["b3"],
      params["wf"], params["bf"])

    return out.reshape(b_pad, 1)[:B]


def init_params(key, nfeat, nhid):
    """Deterministic init mimicking the module's uniform(-stdv, stdv) scheme."""
    def uni(k, shape, fan):
        stdv = 1.0 / np.sqrt(fan)
        return jax.random.uniform(k, shape, jnp.float32, -stdv, stdv)

    ks = jax.random.split(key, 10)
    return {
        "we": uni(ks[0], (IN_FEAT, nfeat), IN_FEAT), "be": uni(ks[1], (1, nfeat), IN_FEAT),
        "w1": uni(ks[2], (nfeat, 50), 50),           "b1": uni(ks[3], (1, 50), 50),
        "w2": uni(ks[4], (50, 30), 30),              "b2": uni(ks[5], (1, 30), 30),
        "w3": uni(ks[6], (30, nhid), nhid),          "b3": uni(ks[7], (1, nhid), nhid),
        "wf": uni(ks[8], (nhid, 1), nhid),           "bf": uni(ks[9], (1, 1), nhid),
    }


def gcn_forward_ref(x, adj, p):
    """Plain-JAX f32 reference of the PyTorch forward (eval-mode dropout)."""
    h = x @ p["we"] + p["be"]
    h = jax.nn.relu(jnp.einsum("bij,bjf->bif", adj, h @ p["w1"]) + p["b1"])
    h = jax.nn.relu(jnp.einsum("bij,bjf->bif", adj, h @ p["w2"]) + p["b2"])
    h = jnp.einsum("bij,bjf->bif", adj, h @ p["w3"]) + p["b3"]
    h = jax.nn.relu(h)
    m = h.mean(axis=1)
    return m @ p["wf"] + p["bf"]


if __name__ == "__main__":
    B, N = 2, 8        # batch, nodes
    nfeat, nhid = 32, 16

    key = jax.random.PRNGKey(0)
    kx, ka, kp = jax.random.split(key, 3)

    x = jax.random.normal(kx, (B, N, IN_FEAT), jnp.float32)
    # symmetric, row-normalized adjacency
    a = jax.random.uniform(ka, (B, N, N), jnp.float32)
    adj = (a + jnp.swapaxes(a, 1, 2)) * 0.5
    adj = adj / jnp.sum(adj, axis=-1, keepdims=True)

    params = init_params(kp, nfeat, nhid)

    out = gcn_forward(x, adj, params)
    out = jax.block_until_ready(out)

    ref = gcn_forward_ref(x, adj, params)
    # Tolerance relaxed vs f32 reference: adj and the GCN support are fed to the
    # MXU in bf16 (with f32 accumulation) per the perf review.
    np.testing.assert_allclose(np.asarray(out), np.asarray(ref), rtol=2e-2, atol=2e-2)

    print("KERNEL_OK")
</pallas_src>

<mosaic_0001>
module attributes {stable_mosaic.version = 11 : i64} {
  func.func @gcn_kernel(%arg0: i32, %arg1: memref<2x8x78xf32, #tpu.memory_space<vmem>>, %arg2: memref<2x8x8xbf16, #tpu.memory_space<vmem>>, %arg3: memref<78x32xf32, #tpu.memory_space<vmem>>, %arg4: memref<1x32xf32, #tpu.memory_space<vmem>>, %arg5: memref<32x50xf32, #tpu.memory_space<vmem>>, %arg6: memref<1x50xf32, #tpu.memory_space<vmem>>, %arg7: memref<50x30xf32, #tpu.memory_space<vmem>>, %arg8: memref<1x30xf32, #tpu.memory_space<vmem>>, %arg9: memref<30x16xf32, #tpu.memory_space<vmem>>, %arg10: memref<1x16xf32, #tpu.memory_space<vmem>>, %arg11: memref<16x1xf32, #tpu.memory_space<vmem>>, %arg12: memref<1x1xf32, #tpu.memory_space<vmem>>, %arg13: memref<1x1x2xf32, #tpu.memory_space<vmem>>) attributes {dimension_semantics = [#tpu.dimension_semantics<parallel>], iteration_bounds = array<i64: 1>, scalar_prefetch = 0 : i64, scratch_operands = 0 : i64, tpu.core_type = #tpu.core_type<tc>, window_params = [{transform_indices = @transform_0, window_bounds = array<i64: 2, 8, 78>}, {transform_indices = @transform_1, window_bounds = array<i64: 2, 8, 8>}, {pipeline_mode = #tpu.pipeline_mode<synchronous>, transform_indices = @transform_2, window_bounds = array<i64: 78, 32>}, {pipeline_mode = #tpu.pipeline_mode<synchronous>, transform_indices = @transform_3, window_bounds = array<i64: 1, 32>}, {pipeline_mode = #tpu.pipeline_mode<synchronous>, transform_indices = @transform_4, window_bounds = array<i64: 32, 50>}, {pipeline_mode = #tpu.pipeline_mode<synchronous>, transform_indices = @transform_5, window_bounds = array<i64: 1, 50>}, {pipeline_mode = #tpu.pipeline_mode<synchronous>, transform_indices = @transform_6, window_bounds = array<i64: 50, 30>}, {pipeline_mode = #tpu.pipeline_mode<synchronous>, transform_indices = @transform_7, window_bounds = array<i64: 1, 30>}, {pipeline_mode = #tpu.pipeline_mode<synchronous>, transform_indices = @transform_8, window_bounds = array<i64: 30, 16>}, {pipeline_mode = #tpu.pipeline_mode<synchronous>, transform_indices = @transform_9, window_bounds = array<i64: 1, 16>}, {pipeline_mode = #tpu.pipeline_mode<synchronous>, transform_indices = @transform_10, window_bounds = array<i64: 16, 1>}, {pipeline_mode = #tpu.pipeline_mode<synchronous>, transform_indices = @transform_11, window_bounds = array<i64: 1, 1>}, {transform_indices = @transform_12, window_bounds = array<i64: 1, 1, 2>}]} {
    %c0 = arith.constant 0 : index
    %c0_0 = arith.constant 0 : index
    %c0_1 = arith.constant 0 : index
    %0 = vector.load %arg2[%c0, %c0_0, %c0_1] : memref<2x8x8xbf16, #tpu.memory_space<vmem>>, vector<2x8x8xbf16>
    %c0_2 = arith.constant 0 : index
    %c0_3 = arith.constant 0 : index
    %c0_4 = arith.constant 0 : index
    %1 = vector.load %arg1[%c0_2, %c0_3, %c0_4] : memref<2x8x78xf32, #tpu.memory_space<vmem>>, vector<2x8x78xf32>
    %2 = vector.shape_cast %1 : vector<2x8x78xf32> to vector<16x78xf32>
    %c0_5 = arith.constant 0 : index
    %c0_6 = arith.constant 0 : index
    %3 = vector.load %arg3[%c0_5, %c0_6] : memref<78x32xf32, #tpu.memory_space<vmem>>, vector<78x32xf32>
    %cst = arith.constant dense<0.000000e+00> : vector<16x32xf32>
    %4 = tpu.matmul %2, %3, %cst {dimension_numbers = #tpu.dot_dimension_numbers<[1], [0], [0], [1], [0, 0, 1, 1], [], []>} : vector<16x78xf32>, vector<78x32xf32>, vector<16x32xf32> -> vector<16x32xf32>
    %c0_7 = arith.constant 0 : index
    %c0_8 = arith.constant 0 : index
    %5 = vector.load %arg4[%c0_7, %c0_8] : memref<1x32xf32, #tpu.memory_space<vmem>>, vector<1x32xf32>
    %6 = vector.broadcast %5 : vector<1x32xf32> to vector<16x32xf32>
    %7 = arith.addf %4, %6 : vector<16x32xf32>
    %c0_9 = arith.constant 0 : index
    %c0_10 = arith.constant 0 : index
    %8 = vector.load %arg5[%c0_9, %c0_10] : memref<32x50xf32, #tpu.memory_space<vmem>>, vector<32x50xf32>
    %cst_11 = arith.constant dense<0.000000e+00> : vector<16x50xf32>
    %9 = tpu.matmul %7, %8, %cst_11 {dimension_numbers = #tpu.dot_dimension_numbers<[1], [0], [0], [1], [0, 0, 1, 1], [], []>} : vector<16x32xf32>, vector<32x50xf32>, vector<16x50xf32> -> vector<16x50xf32>
    %10 = vector.shape_cast %9 : vector<16x50xf32> to vector<2x8x50xf32>
    %11 = arith.truncf %10 : vector<2x8x50xf32> to vector<2x8x50xbf16>
    "tpu.trace_start"() <{level = 10 : i32, message = "bij,bjf->bif"}> : () -> ()
    %cst_12 = arith.constant dense<0.000000e+00> : vector<2x8x50xf32>
    %12 = tpu.matmul %0, %11, %cst_12 {dimension_numbers = #tpu.dot_dimension_numbers<[2], [1], [1], [2], [0, 0, 0, 1, 1, 2], [0], [0]>} : vector<2x8x8xbf16>, vector<2x8x50xbf16>, vector<2x8x50xf32> -> vector<2x8x50xf32>
    "tpu.trace_stop"() : () -> ()
    %c0_13 = arith.constant 0 : index
    %c0_14 = arith.constant 0 : index
    %13 = vector.load %arg6[%c0_13, %c0_14] : memref<1x50xf32, #tpu.memory_space<vmem>>, vector<1x50xf32>
    %14 = vector.shape_cast %13 : vector<1x50xf32> to vector<1x1x50xf32>
    %15 = vector.broadcast %14 : vector<1x1x50xf32> to vector<2x8x50xf32>
    %16 = arith.addf %12, %15 : vector<2x8x50xf32>
    %cst_15 = arith.constant 0.000000e+00 : f32
    %17 = vector.broadcast %cst_15 : f32 to vector<2x8x50xf32>
    %18 = arith.maximumf %16, %17 : vector<2x8x50xf32>
    %19 = vector.shape_cast %18 : vector<2x8x50xf32> to vector<16x50xf32>
    %c0_16 = arith.constant 0 : index
    %c0_17 = arith.constant 0 : index
    %20 = vector.load %arg7[%c0_16, %c0_17] : memref<50x30xf32, #tpu.memory_space<vmem>>, vector<50x30xf32>
    %cst_18 = arith.constant dense<0.000000e+00> : vector<16x30xf32>
    %21 = tpu.matmul %19, %20, %cst_18 {dimension_numbers = #tpu.dot_dimension_numbers<[1], [0], [0], [1], [0, 0, 1, 1], [], []>} : vector<16x50xf32>, vector<50x30xf32>, vector<16x30xf32> -> vector<16x30xf32>
    %22 = vector.shape_cast %21 : vector<16x30xf32> to vector<2x8x30xf32>
    %23 = arith.truncf %22 : vector<2x8x30xf32> to vector<2x8x30xbf16>
    "tpu.trace_start"() <{level = 10 : i32, message = "bij,bjf->bif"}> : () -> ()
    %cst_19 = arith.constant dense<0.000000e+00> : vector<2x8x30xf32>
    %24 = tpu.matmul %0, %23, %cst_19 {dimension_numbers = #tpu.dot_dimension_numbers<[2], [1], [1], [2], [0, 0, 0, 1, 1, 2], [0], [0]>} : vector<2x8x8xbf16>, vector<2x8x30xbf16>, vector<2x8x30xf32> -> vector<2x8x30xf32>
    "tpu.trace_stop"() : () -> ()
    %c0_20 = arith.constant 0 : index
    %c0_21 = arith.constant 0 : index
    %25 = vector.load %arg8[%c0_20, %c0_21] : memref<1x30xf32, #tpu.memory_space<vmem>>, vector<1x30xf32>
    %26 = vector.shape_cast %25 : vector<1x30xf32> to vector<1x1x30xf32>
    %27 = vector.broadcast %26 : vector<1x1x30xf32> to vector<2x8x30xf32>
    %28 = arith.addf %24, %27 : vector<2x8x30xf32>
    %cst_22 = arith.constant 0.000000e+00 : f32
    %29 = vector.broadcast %cst_22 : f32 to vector<2x8x30xf32>
    %30 = arith.maximumf %28, %29 : vector<2x8x30xf32>
    %31 = vector.shape_cast %30 : vector<2x8x30xf32> to vector<16x30xf32>
    %c0_23 = arith.constant 0 : index
    %c0_24 = arith.constant 0 : index
    %32 = vector.load %arg9[%c0_23, %c0_24] : memref<30x16xf32, #tpu.memory_space<vmem>>, vector<30x16xf32>
    %cst_25 = arith.constant dense<0.000000e+00> : vector<16x16xf32>
    %33 = tpu.matmul %31, %32, %cst_25 {dimension_numbers = #tpu.dot_dimension_numbers<[1], [0], [0], [1], [0, 0, 1, 1], [], []>} : vector<16x30xf32>, vector<30x16xf32>, vector<16x16xf32> -> vector<16x16xf32>
    %34 = vector.shape_cast %33 : vector<16x16xf32> to vector<2x8x16xf32>
    %35 = arith.truncf %34 : vector<2x8x16xf32> to vector<2x8x16xbf16>
    "tpu.trace_start"() <{level = 10 : i32, message = "bij,bjf->bif"}> : () -> ()
    %cst_26 = arith.constant dense<0.000000e+00> : vector<2x8x16xf32>
    %36 = tpu.matmul %0, %35, %cst_26 {dimension_numbers = #tpu.dot_dimension_numbers<[2], [1], [1], [2], [0, 0, 0, 1, 1, 2], [0], [0]>} : vector<2x8x8xbf16>, vector<2x8x16xbf16>, vector<2x8x16xf32> -> vector<2x8x16xf32>
    "tpu.trace_stop"() : () -> ()
    %c0_27 = arith.constant 0 : index
    %c0_28 = arith.constant 0 : index
    %37 = vector.load %arg10[%c0_27, %c0_28] : memref<1x16xf32, #tpu.memory_space<vmem>>, vector<1x16xf32>
    %38 = vector.shape_cast %37 : vector<1x16xf32> to vector<1x1x16xf32>
    %39 = vector.broadcast %38 : vector<1x1x16xf32> to vector<2x8x16xf32>
    %40 = arith.addf %36, %39 : vector<2x8x16xf32>
    %41 = vector.shape_cast %40 : vector<2x8x16xf32> to vector<16x16xf32>
    %cst_29 = arith.constant 0.000000e+00 : f32
    %42 = vector.broadcast %cst_29 : f32 to vector<16x16xf32>
    %43 = arith.maximumf %41, %42 : vector<16x16xf32>
    %44 = vector.shape_cast %43 : vector<16x16xf32> to vector<2x8x16xf32>
    %cst_30 = arith.constant dense<0.000000e+00> : vector<2x16xf32>
    %45 = vector.multi_reduction <add>, %44, %cst_30 [1] : vector<2x8x16xf32> to vector<2x16xf32>
    %cst_31 = arith.constant 1.250000e-01 : f32
    %46 = vector.broadcast %cst_31 : f32 to vector<2x16xf32>
    %47 = arith.mulf %45, %46 : vector<2x16xf32>
    %c0_32 = arith.constant 0 : index
    %c0_33 = arith.constant 0 : index
    %48 = vector.load %arg11[%c0_32, %c0_33] : memref<16x1xf32, #tpu.memory_space<vmem>>, vector<16x1xf32>
    %cst_34 = arith.constant dense<0.000000e+00> : vector<2x1xf32>
    %49 = tpu.matmul %47, %48, %cst_34 {dimension_numbers = #tpu.dot_dimension_numbers<[1], [0], [0], [1], [0, 0, 1, 1], [], []>} : vector<2x16xf32>, vector<16x1xf32>, vector<2x1xf32> -> vector<2x1xf32>
    %c0_35 = arith.constant 0 : index
    %c0_36 = arith.constant 0 : index
    %50 = vector.load %arg12[%c0_35, %c0_36] : memref<1x1xf32, #tpu.memory_space<vmem>>, vector<1x1xf32>
    %51 = vector.broadcast %50 : vector<1x1xf32> to vector<2x1xf32>
    %52 = arith.addf %49, %51 : vector<2x1xf32>
    %53 = vector.shape_cast %52 : vector<2x1xf32> to vector<1x1x2xf32>
    %c0_37 = arith.constant 0 : index
    %c0_38 = arith.constant 0 : index
    %c0_39 = arith.constant 0 : index
    %54 = vector.load %arg13[%c0_37, %c0_38, %c0_39] : memref<1x1x2xf32, #tpu.memory_space<vmem>>, vector<1x1x2xf32>
    tpu.vector_store %arg13[%c0_37, %c0_38, %c0_39], %53 {strides = array<i32>} : memref<1x1x2xf32, #tpu.memory_space<vmem>>, vector<1x1x2xf32>,
    return
  }
  func.func @transform_0(%arg0: i32) -> (i32, i32, i32) {
    %c0_i32 = arith.constant 0 : i32
    %c0_i32_0 = arith.constant 0 : i32
    %c0_i32_1 = arith.constant 0 : i32
    return %arg0, %c0_i32, %c0_i32_0 : i32, i32, i32
  }
  func.func @transform_1(%arg0: i32) -> (i32, i32, i32) {
    %c0_i32 = arith.constant 0 : i32
    %c0_i32_0 = arith.constant 0 : i32
    %c0_i32_1 = arith.constant 0 : i32
    return %arg0, %c0_i32, %c0_i32_0 : i32, i32, i32
  }
  func.func @transform_2(%arg0: i32) -> (i32, i32) {
    %c0_i32 = arith.constant 0 : i32
    %c0_i32_0 = arith.constant 0 : i32
    %c0_i32_1 = arith.constant 0 : i32
    return %c0_i32, %c0_i32_0 : i32, i32
  }
  func.func @transform_3(%arg0: i32) -> (i32, i32) {
    %c0_i32 = arith.constant 0 : i32
    %c0_i32_0 = arith.constant 0 : i32
    %c0_i32_1 = arith.constant 0 : i32
    return %c0_i32, %c0_i32_0 : i32, i32
  }
  func.func @transform_4(%arg0: i32) -> (i32, i32) {
    %c0_i32 = arith.constant 0 : i32
    %c0_i32_0 = arith.constant 0 : i32
    %c0_i32_1 = arith.constant 0 : i32
    return %c0_i32, %c0_i32_0 : i32, i32
  }
  func.func @transform_5(%arg0: i32) -> (i32, i32) {
    %c0_i32 = arith.constant 0 : i32
    %c0_i32_0 = arith.constant 0 : i32
    %c0_i32_1 = arith.constant 0 : i32
    return %c0_i32, %c0_i32_0 : i32, i32
  }
  func.func @transform_6(%arg0: i32) -> (i32, i32) {
    %c0_i32 = arith.constant 0 : i32
    %c0_i32_0 = arith.constant 0 : i32
    %c0_i32_1 = arith.constant 0 : i32
    return %c0_i32, %c0_i32_0 : i32, i32
  }
  func.func @transform_7(%arg0: i32) -> (i32, i32) {
    %c0_i32 = arith.constant 0 : i32
    %c0_i32_0 = arith.constant 0 : i32
    %c0_i32_1 = arith.constant 0 : i32
    return %c0_i32, %c0_i32_0 : i32, i32
  }
  func.func @transform_8(%arg0: i32) -> (i32, i32) {
    %c0_i32 = arith.constant 0 : i32
    %c0_i32_0 = arith.constant 0 : i32
    %c0_i32_1 = arith.constant 0 : i32
    return %c0_i32, %c0_i32_0 : i32, i32
  }
  func.func @transform_9(%arg0: i32) -> (i32, i32) {
    %c0_i32 = arith.constant 0 : i32
    %c0_i32_0 = arith.constant 0 : i32
    %c0_i32_1 = arith.constant 0 : i32
    return %c0_i32, %c0_i32_0 : i32, i32
  }
  func.func @transform_10(%arg0: i32) -> (i32, i32) {
    %c0_i32 = arith.constant 0 : i32
    %c0_i32_0 = arith.constant 0 : i32
    %c0_i32_1 = arith.constant 0 : i32
    return %c0_i32, %c0_i32_0 : i32, i32
  }
  func.func @transform_11(%arg0: i32) -> (i32, i32) {
    %c0_i32 = arith.constant 0 : i32
    %c0_i32_0 = arith.constant 0 : i32
    %c0_i32_1 = arith.constant 0 : i32
    return %c0_i32, %c0_i32_0 : i32, i32
  }
  func.func @transform_12(%arg0: i32) -> (i32, i32, i32) {
    %c0_i32 = arith.constant 0 : i32
    %c0_i32_0 = arith.constant 0 : i32
    %c0_i32_1 = arith.constant 0 : i32
    return %arg0, %c0_i32, %c0_i32_0 : i32, i32, i32
  }
}

</mosaic_0001>

<bundles_post_ra>
// kernel: tpu_custom_call.1
= control target key start
LH: loop header
LB: loop body
LE: loop exit
PB: predicated region body
PF: predicated region fallthrough
CT: control target
= control target key end

     0   :  { %s1360_s0 = inlined_call_operand.vmem [shape: f32[2,8,78], index: 0, kind: input, shape index: {}]   ;;  %s1361_s1 = inlined_call_operand.vmem [shape: bf16[2,8,8], index: 1, kind: input, shape index: {}]   ;;  %s1362_s2 = inlined_call_operand.vmem [shape: f32[78,32], index: 2, kind: input, shape index: {}]   ;;  %s1363_s3 = inlined_call_operand.vmem [shape: f32[1,32], index: 3, kind: input, shape index: {}]   ;;  %s1364_s4 = inlined_call_operand.vmem [shape: f32[32,50], index: 4, kind: input, shape index: {}]   ;;  %s1365_s5 = inlined_call_operand.vmem [shape: f32[1,50], index: 5, kind: input, shape index: {}]   ;;  %s1366_s6 = inlined_call_operand.vmem [shape: f32[50,30], index: 6, kind: input, shape index: {}]   ;;  %s1367_s7 = inlined_call_operand.vmem [shape: f32[1,30], index: 7, kind: input, shape index: {}]   ;;  %s1368_s8 = inlined_call_operand.vmem [shape: f32[30,16], index: 8, kind: input, shape index: {}]   ;;  %s1369_s9 = inlined_call_operand.vmem [shape: f32[1,16], index: 9, kind: input, shape index: {}]   ;;  %s1370_s10 = inlined_call_operand.vmem [shape: f32[16,1], index: 10, kind: input, shape index: {}]   ;;  %s1371_s11 = inlined_call_operand.<no memory space> [shape: f32[1,1], index: 11, kind: input, shape index: {}]   ;;  %s1372_s12 = inlined_call_operand.hbm [shape: f32[1,1,2], index: 12, kind: output, shape index: {}]  }
   0x1   :  { %v17_v0 = vstv %s1371_s11 }
   0x2   :  { %18 = vst [vmem:[#allocation2] sm:$0x1] %v17_v0 }
   0x3   :  { %v49_v1 = vld [vmem:[%s1362_s2] sm:$0xff]  ;;  %v50_v2 = vld [vmem:[%s1362_s2 + $0x8] sm:$0xff]  ;;  %v51_v3 = vld [vmem:[%s1362_s2 + $0x10] sm:$0xff]  ;;  %vm66_vm0 = vcmask 637952  }
   0x4   :  { %v1024_v4 = vpack.c.bf16 %v50_v2, %v49_v1  ;;  %v52_v5 = vld [vmem:[%s1362_s2 + $0x18] sm:$0xff]  ;;  %v53_v7 = vld [vmem:[%s1362_s2 + $0x20] sm:$0xff]  ;;  %v54_v8 = vld [vmem:[%s1362_s2 + $0x28] sm:$0xff] }
   0x5   :  { %v1028_v6 = vpack.c.bf16 %v52_v5, %v51_v3  ;;  %v47_v9 = vld [vmem:[%s1360_s0] sm:$0xff]  ;;  %v153_v11 = vld [vmem:[%s1364_s4 + $0x8] sm:$0xff]  ;;  %v1032_v12 = vpack.c.bf16 %v54_v8, %v53_v7 }
   0x6   :  { %1025 = vmatprep.subr.bf16.mxu0 %v1024_v4  ;;  %939 = vmatprep.mubr.msk.f32.mxu0 %vm66_vm0, %v47_v9  ;;  %v152_v10 = vld [vmem:[%s1364_s4] sm:$0xff] }
   0x7   :  { %1027 = vmatpush3.bf16.msra.mxu0 %v1024_v4  ;;  %v1046_v13 = vpack.c.bf16 %v153_v11, %v152_v10 }
   0x8   :  { %1029 = vmatprep.subr.bf16.mxu0 %v1028_v6 }
   0x9   :  { %19 = vsyncpa [#allocation4], 0  ;;  %v55_v14 = vld [vmem:[%s1362_s2 + $0x30] sm:$0xff]  ;;  %v56_v15 = vld [vmem:[%s1362_s2 + $0x38] sm:$0xff]  ;;  %1047 = vmatprep.subr.bf16.mxu1 %v1046_v13  ;;  %vm73_vm1 = vcmask 1045504   ;;  %vm1110_vm2 = vmmov 1  }
   0xa   :  { %1049 = vmatpush3.bf16.msra.mxu1 %v1046_v13  ;;  %v1036_v16 = vpack.c.bf16 %v56_v15, %v55_v14  ;;  %v57_v17 = vld [vmem:[%s1362_s2 + $0x40] sm:$0xff]  ;;  %v58_v18 = vld [vmem:[%s1362_s2 + $0x48] sm:$0x3f]  ;;  %vm1224_vm3 = vmpackc.low %vm73_vm1, %vm1110_vm2  ;;  %vm156_vm4 = vcmask 261120   ;;  %v1111_v30 = vmov 0.0   ;;  %vm1112_vm5 = vmmov 0  }
   0xb   :  { %1031 = vmatpush3.bf16.msra.mxu0 %v1028_v6  ;;  %v1040_v19 = vpack.c.bf16 %v58_v18, %v57_v17  ;;  %v48_v21 = vld [vmem:[%s1360_s0 + $0x8] sm:$0xff]  ;;  %v154_v22 = vld [vmem:[%s1364_s4 + $0x10] sm:$0xff]  ;;  %v155_v23 = vld [vmem:[%s1364_s4 + $0x18] sm:$0xff]  ;;  %vm251_vm6 = vcmask 1043456   ;;  %vm247_vm7 = vcmask 64512   ;;  %vm357_vm8 = vcmask 1041408  }
   0xc   :  { %1033 = vmatprep.subr.bf16.mxu0 %v1032_v12  ;;  %v1050_v24 = vpack.c.bf16 %v155_v23, %v154_v22  ;;  %v848_v25 = vld [vmem:[%s1363_s3] ss:$0 sm:$0xff]  ;;  %v344_v32 = vld [vmem:[%s1366_s6 + $0x8] sm:$0xff]  ;;  %v1270_v41 = vld [vmem:[%s1361_s1 + $0x4] sm:$0xf]  ;;  %vm350_vm9 = vcmask 408576  }
   0xd   :  { %v343_v31 = vld [vmem:[%s1366_s6] sm:$0xff]  ;;  %v345_v42 = vld [vmem:[%s1366_s6 + $0x10] sm:$0xff]  ;;  %v346_v43 = vld [vmem:[%s1366_s6 + $0x18] sm:$0xff]  ;;  %vm537_vm10 = vcmask 244736   ;;  %vm719_vm11 = vcmask 130048   ;;  %vm747_vm12 = vcmask 1041409  }
   0xe   :  { %1051 = vmatprep.subr.bf16.mxu1 %v1050_v24  ;;  %v1054_v33 = vpack.c.bf16 %v344_v32, %v343_v31  ;;  %v1258_v39 = vld [vmem:[%s1361_s1] sm:$0xf]  ;;  %v1058_v44 = vpack.c.bf16 %v346_v43, %v345_v42  ;;  %v348_v46 = vld [vmem:[%s1366_s6 + $0x28] sm:$0xff]  ;;  %v349_v48 = vld [vmem:[%s1366_s6 + $0x30] sm:$0x3]  ;;  %vm832_vm13 = vcmask 8192  }
   0xf   :  { %1035 = vmatpush3.bf16.msra.mxu0 %v1032_v12  ;;  %1053 = vmatpush3.bf16.msra.mxu1 %v1050_v24  ;;  %v347_v45 = vld [vmem:[%s1366_s6 + $0x20] sm:$0xff]  ;;  %v534_v5 = vld [vmem:[%s1368_s8 + $0x8] sm:$0xff]  ;;  %v535_v7 = vld [vmem:[%s1368_s8 + $0x10] sm:$0xff] }
  0x10   :  { %1037 = vmatprep.subr.bf16.mxu0 %v1036_v16  ;;  %953 = vmatprep.subr.bf16.mxu1 %v1111_v30  ;;  %v1062_v47 = vpack.c.bf16 %v348_v46, %v347_v45  ;;  %v854_v49 = vld [vmem:[%s1365_s5] ss:$0 sm:$0xff]  ;;  %v536_v8 = vld [vmem:[%s1368_s8 + $0x18] sm:$0x3f]  ;;  %v737_v31 = vld [vmem:[%s1370_s10 + $0x8] sm:$0xff] }
  0x11   :  { %v533_v4 = vld [vmem:[%s1368_s8] sm:$0xff]  ;;  %v1070_v9 = vpack.c.bf16 %v536_v8, %v535_v7 }
  0x12   :  { %v1066_v6 = vpack.c.bf16 %v534_v5, %v533_v4  ;;  %v860_v10 = vld [vmem:[%s1367_s7] ss:$0 sm:$0xff]  ;;  %v825_v4 = vlaneseq }
  0x13   :  { %1039 = vmatpush3.bf16.msra.mxu0 %v1036_v16 }
  0x14   :  { %1042 = vmatprep.subr.msk.bf16.mxu0 %vm1224_vm3, %v1040_v19  ;;  %v826_v5 = vand.u32 127, %v825_v4 }
  0x17   :  { %1045 = vmatpush3.bf16.msk.msra.mxu0 %vm1224_vm3, %v1040_v19 }
  0x18   :  { %1055 = vmatprep.subr.bf16.mxu0 %v1054_v33 }
  0x1a   :  { %940 = vmatmul.mubr.msk.f32.vlgmr.msra.gmra.mrb[0].mxu0 %vm66_vm0, %v48_v21 }
  0x1b   :  { %1057 = vmatpush3.bf16.msra.mxu0 %v1054_v33  ;;  %v1113_v33 = vmov 0.0|0.0  }
  0x1c   :  { %1059 = vmatprep.subr.bf16.mxu0 %v1058_v44 }
  0x1f   :  { %1061 = vmatpush3.bf16.msra.mxu0 %v1058_v44 }
  0x20   :  { %1063 = vmatprep.subr.bf16.mxu0 %v1062_v47 }
  0x23   :  { %1065 = vmatpush3.bf16.msra.mxu0 %v1062_v47 }
  0x24   :  { %977 = vmatprep.subr.msk.mxu0 %vm357_vm8, %v349_v48 }
  0x27   :  { %978 = vmatpush3.msk.msra.mxu0 %vm357_vm8, %v349_v48 }
  0x28   :  { %1067 = vmatprep.subr.bf16.mxu0 %v1066_v6 }
  0xed   :  { %v941_v26 = vpop.f32.mrb[0].mxu0 }
  0xee   :  { %v143_v27 = vpop.f32.mrb[1].mxu0  ;;  %v149_v29 = vadd.f32 %v941_v26, %v848_v25 }
  0xef   :  { %v144_v28 = vadd.f32 %v848_v25, %v143_v27 }
  0xf1   :  { %950 = vmatprep.mubr.msk.f32.mxu1 %vm156_vm4, %v144_v28 }
  0xf2   :  { %951 = vmatmul.mubr.msk.f32.vlgmr.msra.gmra.mrb[0].mxu1 %vm156_vm4, %v149_v29  ;;  %v736_v29 = vld [vmem:[%s1370_s10] sm:$0xff] }
  0xf3   :  { %955 = vmatprep.mubr.msk.bf16.mxu1 %vm1112_vm5, %v1111_v30  ;;  %v1077_v32 = vpack.c.bf16 %v737_v31, %v736_v29 }
 0x1c5   :  { %v952_v34 = vpop.f32.mrb[0].mxu1 }
 0x1c6   :  { %v229_v35 = vpop.f32.mrb[1].mxu1  ;;  %v239_v37 = vpack.c.bf16 %v952_v34, %v952_v34  ;;  %v866_v34 = vld [vmem:[%s1369_s9] ss:$0 sm:$0xff]  ;;  %s1115_s9 = smov [#allocation3]  }
 0x1c7   :  { %v238_v36 = vpack.c.bf16 %v229_v35, %v229_v35  ;;  %s840_s10 = sshll.u32 %s1115_s9, 4  ;;  %s841_s10 = int_to_ptr.vmem [resolvable:$true] %s840_s10 }
 0x1c8   :  { %v299_v40 = vsel %vm251_vm6, %v239_v37, 0  ;;  %s1086_s23 = scalar_lea.vmem %s841_s10, 16  ;;  %s1090_s24 = scalar_lea.vmem %s841_s10, 32 }
 0x1c9   :  { %v253_v38 = vsel %vm251_vm6, %v238_v36, 0  ;;  %p1087_p0 = scmp.ne.s32.totalorder %s841_s10, %s1086_s23  ;;  %p1091_p1 = scmp.lt.s32.totalorder %s841_s10, %s841_s10 }
 0x1ca   :  { %954 = vmatpush3.bf16.msra.mxu1 %v253_v38  ;;  %p1092_p2 = scmp.lt.s32.totalorder %s1090_s24, %s1086_s23 }
 0x1cb   :  { %959 = vmatprep.subr.bf16.mxu1 %v1111_v30 }
 0x1cc   :  { %p1093_p3 = por %p1092_p2, %p1091_p1 }
 0x1cd   :  { %956 = vmatmul.mubr.msk.bf16.vlgmr.msra.gmra.mrb[4].mxu1 %vm247_vm7, %v1258_v39 }
 0x1ce   :  { %960 = vmatpush3.bf16.msra.mxu1 %v299_v40  ;;  %961 = vmatprep.mubr.msk.bf16.mxu1 %vm1112_vm5, %v1111_v30  ;;  %p1094_p4 = pnand %p1093_p3, %p1087_p0 }
 0x1cf   :  { %982 = vmatprep.subr.bf16.mxu1 %v1111_v30 }
 0x1d5   :  { %962 = vmatmul.mubr.msk.bf16.vlgmr.msra.gmra.mrb[8].mxu1 %vm247_vm7, %v1270_v41 }
 0x1d6   :  { %984 = vmatprep.mubr.msk.bf16.mxu1 %vm1112_vm5, %v1111_v30 }
 0x2a0   :  { %v289_v50 = vpop.f32.mrb[4].mxu1 }
 0x2a1   :  { %v290_v51 = vadd.f32 %v854_v49, %v289_v50  ;;  %v957_v52 = vpop.f32.mrb[5].mxu1 }
 0x2a2   :  { %v292_v53 = vpop.f32.mrb[6].mxu1 }
 0x2a3   :  { %v341_v54 = vmax.f32 %v290_v51, 0.0  ;;  %v958_v55 = vpop.f32.mrb[7].mxu1 }
 0x2a5   :  { %979 = vmatprep.mubr.msk.f32.mxu0 %vm350_vm9, %v341_v54 }
 0x2a8   :  { %v335_v56 = vpop.f32.mrb[8].mxu1 }
 0x2a9   :  { %v336_v57 = vadd.f32 %v854_v49, %v335_v56  ;;  %v963_v58 = vpop.f32.mrb[9].mxu1 }
 0x2aa   :  { %v338_v59 = vpop.f32.mrb[10].mxu1 }
 0x2ab   :  { %v342_v60 = vmax.f32 %v336_v57, 0.0  ;;  %v964_v61 = vpop.f32.mrb[11].mxu1 }
 0x2ad   :  { %980 = vmatmul.mubr.msk.f32.vlgmr.msra.gmra.mrb[2].mxu0 %vm350_vm9, %v342_v60 }
 0x2ae   :  { %1069 = vmatpush3.bf16.msra.mxu0 %v1066_v6  ;;  %v828_v6 = vshrl.u32 %v825_v4, 7 }
 0x2af   :  { %1072 = vmatprep.subr.msk.bf16.mxu0 %vm1224_vm3, %v1070_v9 }
 0x2b0   :  { %v829_v7 = vsub.s32 %v826_v5, %v828_v6 }
 0x2b2   :  { %1075 = vmatpush3.bf16.msk.msra.mxu0 %vm1224_vm3, %v1070_v9 }
 0x2b3   :  { %1011 = vmatprep.subr.bf16.mxu0 %v1111_v30 }
 0x380   :  { %v981_v62 = vpop.f32.mrb[2].mxu0 }
 0x381   :  { %v427_v63 = vpop.f32.mrb[3].mxu0  ;;  %v437_v1 = vpack.c.bf16 %v981_v62, %v981_v62 }
 0x382   :  { %v436_v0 = vpack.c.bf16 %v427_v63, %v427_v63  ;;  %v1114_v63 = vmov 0  }
 0x383   :  { %v489_v3 = vsel %vm251_vm6, %v437_v1, 0  ;;  %1085 = vset.pattern.permute.xlu0 %v1114_v63 }
 0x384   :  { %v446_v2 = vsel %vm251_vm6, %v436_v0, 0  ;;  %v869_v0 = vld [vmem:[#allocation2] ss:$0 sm:$0xff] }
 0x385   :  { %983 = vmatpush3.bf16.msra.mxu1 %v446_v2 }
 0x386   :  { %988 = vmatprep.subr.bf16.mxu1 %v1111_v30 }
 0x388   :  { %985 = vmatmul.mubr.msk.bf16.vlgmr.msra.gmra.mrb[12].mxu1 %vm247_vm7, %v1258_v39 }
 0x389   :  { %989 = vmatpush3.bf16.msra.mxu1 %v489_v3  ;;  %990 = vmatprep.mubr.msk.bf16.mxu1 %vm1112_vm5, %v1111_v30 }
 0x38a   :  { %1005 = vmatprep.subr.bf16.mxu1 %v1111_v30 }
 0x390   :  { %991 = vmatmul.mubr.msk.bf16.vlgmr.msra.gmra.mrb[16].mxu1 %vm247_vm7, %v1270_v41 }
 0x391   :  { %1007 = vmatprep.mubr.msk.bf16.mxu1 %vm1112_vm5, %v1111_v30 }
 0x45b   :  { %v482_v11 = vpop.f32.mrb[12].mxu1 }
 0x45c   :  { %v483_v12 = vadd.f32 %v860_v10, %v482_v11  ;;  %v986_v13 = vpop.f32.mrb[13].mxu1 }
 0x45d   :  { %v485_v14 = vpop.f32.mrb[14].mxu1 }
 0x45e   :  { %v531_v15 = vmax.f32 %v483_v12, 0.0  ;;  %v987_v16 = vpop.f32.mrb[15].mxu1 }
 0x460   :  { %1002 = vmatprep.mubr.msk.f32.mxu0 %vm537_vm10, %v531_v15 }
 0x463   :  { %v525_v17 = vpop.f32.mrb[16].mxu1 }
 0x464   :  { %v526_v18 = vadd.f32 %v860_v10, %v525_v17  ;;  %v992_v19 = vpop.f32.mrb[17].mxu1 }
 0x465   :  { %v528_v21 = vpop.f32.mrb[18].mxu1 }
 0x466   :  { %v532_v20 = vmax.f32 %v526_v18, 0.0  ;;  %v993_v22 = vpop.f32.mrb[19].mxu1 }
 0x468   :  { %1003 = vmatmul.mubr.msk.f32.vlgmr.msra.gmra.mrb[4].mxu0 %vm537_vm10, %v532_v20 }
 0x469   :  { %1013 = vmatprep.mubr.msk.bf16.mxu0 %vm1112_vm5, %v1111_v30 }
 0x53b   :  { %v1004_v23 = vpop.f32.mrb[4].mxu0 }
 0x53c   :  { %v623_v24 = vpack.c.bf16 %v1004_v23, %v1004_v23  ;;  %v613_v25 = vpop.f32.mrb[5].mxu0 }
 0x53d   :  { %v622_v26 = vpack.c.bf16 %v613_v25, %v613_v25 }
 0x53e   :  { %v675_v27 = vsel %vm251_vm6, %v623_v24, 0 }
 0x53f   :  { %v632_v28 = vsel %vm251_vm6, %v622_v26, 0  ;;  %1012 = vmatpush3.bf16.msra.mxu0 %v675_v27 }
 0x540   :  { %1006 = vmatpush3.bf16.msra.mxu1 %v632_v28 }
 0x541   :  { %1076 = vmatprep.subr.bf16.mxu1 %v1113_v33 }
 0x542   :  { %1014 = vmatmul.mubr.msk.bf16.vlgmr.msra.gmra.mrb[8].mxu0 %vm247_vm7, %v1270_v41 }
 0x543   :  { %1008 = vmatmul.mubr.msk.bf16.vlgmr.msra.gmra.mrb[20].mxu1 %vm247_vm7, %v1258_v39 }
 0x544   :  { %1021 = vmatprep.mubr.msk.f32.mxu1 %vm1112_vm5, %v1111_v30  ;;  %1078 = vmatpush3.bf16.msra.mxu1 %v1077_v32 }
 0x615   :  { %v711_v35 = vpop.f32.mrb[8].mxu0 }
 0x616   :  { %v712_v36 = vadd.f32 %v866_v34, %v711_v35  ;;  %v668_v37 = vpop.f32.mrb[20].mxu1  ;;  %v1015_v30 = vpop.f32.mrb[9].mxu0 }
 0x617   :  { %v669_v38 = vadd.f32 %v866_v34, %v668_v37  ;;  %v1009_v39 = vpop.f32.mrb[21].mxu1  ;;  %v714_v40 = vpop.f32.mrb[10].mxu0 }
 0x618   :  { %v718_v41 = vmax.f32 %v712_v36, 0.0  ;;  %v671_v42 = vpop.f32.mrb[22].mxu1  ;;  %v1016_v43 = vpop.f32.mrb[11].mxu0 }
 0x619   :  { %v717_v44 = vmax.f32 %v669_v38, 0.0  ;;  %v1010_v45 = vpop.f32.mrb[23].mxu1 }
 0x61a   :  { %v727_v46 = vsel %vm719_vm11, %v718_v41, 0.0 }
 0x61b   :  { %v728_v47 = vrot.slane %v727_v46, 4  ;;  %v720_v48 = vsel %vm719_vm11, %v717_v44, 0.0 }
 0x61c   :  { %v721_v49 = vrot.slane %v720_v48, 4 }
 0x61d   :  { %v729_v50 = vadd.f32 %v728_v47, %v727_v46 }
 0x61e   :  { %v722_v51 = vadd.f32 %v721_v49, %v720_v48 }
 0x61f   :  { %v730_v52 = vrot.slane %v729_v50, 2 }
 0x620   :  { %v723_v53 = vrot.slane %v722_v51, 2 }
 0x621   :  { %v731_v54 = vadd.f32 %v730_v52, %v729_v50 }
 0x622   :  { %v724_v55 = vadd.f32 %v723_v53, %v722_v51 }
 0x623   :  { %v732_v56 = vrot.slane %v731_v54, 1 }
 0x624   :  { %v725_v57 = vrot.slane %v724_v55, 1 }
 0x625   :  { %v733_v58 = vadd.f32 %v732_v56, %v731_v54 }
 0x626   :  { %v726_v59 = vadd.f32 %v725_v57, %v724_v55 }
 0x627   :  { %v735_v60 = vmul.f32 0.125, %v733_v58 }
 0x628   :  { %v734_v61 = vmul.f32 0.125, %v726_v59 }
 0x62a   :  { %v748_v62 = vsel %vm747_vm12, %v735_v60, %v734_v61 }
 0x62b   :  { %1022 = vmatmul.mubr.msk.f32.vlgmr.msra.gmra.mrb[2].mxu1 %vm719_vm11, %v748_v62 }
 0x6fe   :  { %v817_v1 = vpop.f32.mrb[2].mxu1 }
 0x6ff   :  { %v818_v2 = vadd.f32 %v869_v0, %v817_v1  ;;  %v1023_v3 = vpop.f32.mrb[3].mxu1 }
 0x701   :  { %823 = vperm.xlu0 %1085, %v818_v2  }
 0x780   :  { %v824_v8 = vpop.permute.xlu0 %823 }
 0x781   :  { %v830_v9 = vrot.slane %v824_v8, %v829_v7 }
 0x783   :  { %833 = vst.msk [vmem:[#allocation3] sm:$0x1] %vm832_vm13, %v830_v9 }
 0x784   :  { %1097 = shalt.err (!%p1094_p4)
}
 0x785   :  { %s1098_s27 = scalar_lea.hbm %s1372_s12, 16 }
 0x786   :  { %p1099_p5 = scmp.ne.s32.totalorder %s1372_s12, %s1098_s27  ;;  %p1102_p6 = scmp.lt.u32.totalorder %s1098_s27, %s1372_s12 }
 0x788   :  { %p1104_p7 = pnand %p1102_p6, %p1099_p5 }
 0x78a   :  { %1107 = shalt.err (!%p1104_p7)
}
 0x78b   :  { %843 = dma.vmem_to_hbm [thread:$0]  %s841_s10, 16, %s1372_s12, [#allocation4]  }
 0x78c   :  { %1108 = dma.done.wait [#allocation4], 16  }
 0x78d   :  { %1109 = vsyncadd [#allocation4], 4294967280 }
 0x78e   :  { %847 = vsyncpa [#allocation4], 1 }

</bundles_post_ra>
